<compile_context>
chip_gen: v7x
topology: tpu7x:2x2x1
jax: 0.10.0
libtpu: 0.0.40
codegen_flags: <defaults>
</compile_context>

<pallas_src>
import functools
import math

import jax
import jax.numpy as jnp
import numpy as np
from jax.experimental import pallas as pl
from jax.experimental.pallas import tpu as pltpu

# ----------------------------- hyper-parameters -------------------------------
C = 8                       # conv_ch
NB_ERB = 16                 # nb_erb (divisible by 4)
NB_DF = 16                  # nb_df
H = 32                      # emb_hidden_dim (GRU width)
EMB = C * NB_ERB // 4       # emb_in_dim == emb_out_dim == 32
FC_GROUPS = 16              # enc_lin_groups (df_fc_emb groups)
DF_IN = C * NB_DF // 2      # df_fc_emb input size == 64
EPS = 1e-5

F_E0, F_E1, F_E2, F_E3 = NB_ERB, NB_ERB // 2, NB_ERB // 4, NB_ERB // 4
F_C0, F_C1 = NB_DF, NB_DF // 2

IN_W = NB_ERB + 2 * NB_DF                        # packed input row [erb | spec] = 48
LANES = 256                                      # parameter-slab width (widest merged matrix)

# 128-lane-aligned output slots: (offset, width) for e0, e1, e2, e3, emb, c0
SLOT = {'e0': (0, C * F_E0), 'e1': (128, C * F_E1), 'e2': (256, C * F_E2),
        'e3': (384, C * F_E3), 'emb': (512, EMB), 'c0': (640, C * F_C0)}
OUT_PAD = 6 * 128                                # 768 lanes


# ---------------------------------- kernel ------------------------------------
def make_encoder_kernel(offsets, T):
    """Single grid-less kernel: batched front-end over T frames + short GRU loop."""
    def kernel(p_ref, feats_ref, h0_ref, out_ref, hout_ref, gi_ref, hall_ref):
        dot = functools.partial(jnp.dot, preferred_element_type=jnp.float32)
        relu = lambda v: jnp.maximum(v, 0.0)

        def ld(name):                                    # load next to its single use
            r, nr, nc = offsets[name]
            return p_ref[r:r + nr, 0:nc]

        # ---- frame-parallel portion: batched (T, K) x (K, N) MXU matmuls ----
        x = feats_ref[...]                               # (T, 48)  [erb | spec]
        a = relu(dot(x, ld('WA')) + ld('bA'))            # (T, 256) = [e0 | c0]
        b = relu(dot(a, ld('WB')) + ld('bB'))            # (T, 128) = [e1 | c1]
        c = relu(dot(b, ld('WC')) + ld('bC'))            # (T, 64)  = [e2 | cemb]
        e2 = c[:, 0:C * F_E2]
        cemb = c[:, C * F_E2:C * F_E2 + EMB]
        e3 = relu(dot(e2, ld('WD')) + ld('bD'))          # (T, 32)
        gx = relu(dot(e3, ld('We3')) + dot(cemb, ld('Wc')))   # (T, H)  linear_in(ReLU)
        gi_ref[...] = dot(gx, ld('Wih')) + ld('bih')     # (T, 3H) input-gate pre-activations

        # ---- serial GRU recurrence (only the hidden-dependent math) ----
        WhhT = ld('Whh')                                 # (H, 3H)
        bhh = ld('bhh')                                  # (1, 3H)

        def step(t, h):
            gi_t = gi_ref[pl.ds(t, 1), :]                # (1, 3H)
            gh = dot(h, WhhT) + bhh                      # (1, 3H)
            r = jax.nn.sigmoid(gi_t[:, 0:H] + gh[:, 0:H])
            z = jax.nn.sigmoid(gi_t[:, H:2 * H] + gh[:, H:2 * H])
            n = jnp.tanh(gi_t[:, 2 * H:3 * H] + r * gh[:, 2 * H:3 * H])
            h_new = (1.0 - z) * n + z * h
            hall_ref[pl.ds(t, 1), :] = h_new             # stash for batched linear_out
            return h_new

        h_final = jax.lax.fori_loop(0, T, step, h0_ref[...])
        hout_ref[...] = h_final                          # final hidden, written once

        # ---- batched linear_out on the stacked hidden states ----
        emb = relu(dot(hall_ref[...], ld('Wout')))       # (T, EMB)

        # ---- lane-aligned packed output slab ----
        out_ref[...] = jnp.zeros((T, OUT_PAD), jnp.float32)
        out_ref[:, SLOT['e0'][0]:SLOT['e0'][0] + C * F_E0] = a[:, 0:C * F_E0]
        out_ref[:, SLOT['e1'][0]:SLOT['e1'][0] + C * F_E1] = b[:, 0:C * F_E1]
        out_ref[:, SLOT['e2'][0]:SLOT['e2'][0] + C * F_E2] = e2
        out_ref[:, SLOT['e3'][0]:SLOT['e3'][0] + C * F_E3] = e3
        out_ref[:, SLOT['emb'][0]:SLOT['emb'][0] + EMB] = emb
        out_ref[:, SLOT['c0'][0]:SLOT['c0'][0] + C * F_C0] = a[:, C * F_E0:C * F_E0 + C * F_C0]
    return kernel


def encoder_forward(feat_erb, feat_spec, hidden, packed, offsets):
    """feat_erb (1,1,T,NB_ERB), feat_spec (1,2,T,NB_DF), hidden (1,1,H).
    Runs the streaming Encoder on all T frames in ONE grid-less pallas_call.
    Returns the packed (T, OUT_PAD) output slab and the final hidden (1, H)."""
    T = feat_erb.shape[2]
    erb = feat_erb[0, 0]                                          # (T, NB_ERB)
    spec = jnp.transpose(feat_spec[0], (1, 0, 2)).reshape(T, 2 * NB_DF)
    feats = jnp.concatenate([erb, spec], axis=-1)                 # (T, IN_W)
    h0 = hidden.reshape(1, H)

    vmem = pl.BlockSpec(memory_space=pltpu.MemorySpace.VMEM)      # whole array resident in VMEM
    out_slab, h_out = pl.pallas_call(
        make_encoder_kernel(offsets, T),
        out_shape=(jax.ShapeDtypeStruct((T, OUT_PAD), jnp.float32),
                   jax.ShapeDtypeStruct((1, H), jnp.float32)),
        in_specs=[vmem, vmem, vmem],
        out_specs=(vmem, vmem),
        scratch_shapes=[pltpu.VMEM((T, 3 * H), jnp.float32),      # gi for all frames
                        pltpu.VMEM((T, H), jnp.float32)],         # stacked hidden states
    )(packed, feats, h0)
    return out_slab, h_out


def split_outputs(out_slab, h_out):
    """Slice the packed kernel output back to module layout:
    e0..e3, c0 -> (1, C, T, F);  emb -> (T, 1, EMB);  hidden -> (1, 1, H)."""
    T = out_slab.shape[0]

    def seg(name):
        o, w = SLOT[name]
        return out_slab[:, o:o + w]

    def nchw(a, f):
        return jnp.transpose(a.reshape(T, C, f), (1, 0, 2))[None]

    return (nchw(seg('e0'), F_E0), nchw(seg('e1'), F_E1), nchw(seg('e2'), F_E2),
            nchw(seg('e3'), F_E3), seg('emb')[:, None, :], nchw(seg('c0'), F_C0),
            h_out.reshape(1, 1, H))


# ----------------------- synthetic (PyTorch-like) parameters ------------------
def init_raw_params(key):
    ks = iter(jax.random.split(key, 48))

    def unif(shape, fan_in):
        b = 1.0 / math.sqrt(fan_in)
        return jax.random.uniform(next(ks), shape, jnp.float32, -b, b)

    def bn(c):  # eval-mode BatchNorm2d (gamma, beta, running_mean, running_var)
        gamma = 1.0 + 0.1 * jax.random.normal(next(ks), (c,), jnp.float32)
        beta = 0.1 * jax.random.normal(next(ks), (c,), jnp.float32)
        mean = 0.1 * jax.random.normal(next(ks), (c,), jnp.float32)
        var = 1.0 + 0.2 * jax.random.uniform(next(ks), (c,), jnp.float32)
        return gamma, beta, mean, var

    P = {}
    P['w_erb0'] = unif((C, 1, 3, 3), 9)                  # erb_conv0 (groups=1)
    P['bn0'] = bn(C)
    for name in ('1', '2', '3'):                         # erb_conv1/2/3 (separable)
        P['dw' + name] = unif((C, 1, 1, 3), 3)
        P['pw' + name] = unif((C, C, 1, 1), C)
        P['bn' + name] = bn(C)
    P['w_df0'] = unif((C, 1, 3, 3), 9)                   # df_conv0 (groups=2)
    P['pw_df0'] = unif((C, C, 1, 1), C)
    P['bn_df0'] = bn(C)
    P['dw_df1'] = unif((C, 1, 1, 3), 3)                  # df_conv1 (separable)
    P['pw_df1'] = unif((C, C, 1, 1), C)
    P['bn_df1'] = bn(C)
    P['w_fc'] = unif((FC_GROUPS, DF_IN // FC_GROUPS, EMB // FC_GROUPS),
                     DF_IN // FC_GROUPS)                 # df_fc_emb
    P['w_lin_in'] = unif((1, EMB, H), EMB)               # emb_gru.linear_in
    P['w_ih'] = unif((3 * H, H), H)                      # GRU weight_ih_l0
    P['w_hh'] = unif((3 * H, H), H)                      # GRU weight_hh_l0
    P['b_ih'] = unif((3 * H,), H)
    P['b_hh'] = unif((3 * H,), H)
    P['w_lin_out'] = unif((1, H, EMB), H)                # emb_gru.linear_out
    return P


def fold_and_pack(P):
    """Fold eval-mode BN, depthwise+pointwise convs, stride/pad and layout
    permutations into dense matrices, merge same-depth stages into block
    diagonals, and pack everything into one (rows, 256) f32 slab."""
    def npa(x):
        return np.asarray(x, np.float64)

    def bn_fold(bn):
        g, b, mu, v = (npa(t) for t in bn)
        s = g / np.sqrt(v + EPS)
        return s, b - mu * s

    # erb_conv0: Conv2d(1,C,(3,3)), causal time pad -> only the last time tap
    # touches the single streaming frame; freq pad 1.
    s0, o0 = bn_fold(P['bn0'])
    w0 = npa(P['w_erb0'])[:, 0, 2, :]                    # (C, 3)
    G0 = np.zeros((NB_ERB, C * NB_ERB))
    for oc in range(C):
        for j in range(NB_ERB):
            for k in range(3):
                i = j + k - 1
                if 0 <= i < NB_ERB:
                    G0[i, oc * NB_ERB + j] += s0[oc] * w0[oc, k]
    b0 = np.repeat(o0, NB_ERB)[None, :]

    def sep_matrix(dw, pw, bn, f_in, stride):
        wd = npa(dw)[:, 0, 0, :]                         # (C, 3)
        wp = npa(pw)[:, :, 0, 0]                         # (C, C)
        s, o = bn_fold(bn)
        f_out = (f_in + 2 - 3) // stride + 1
        G = np.zeros((C * f_in, C * f_out))
        for oc in range(C):
            for ic in range(C):
                coeff = s[oc] * wp[oc, ic]
                for j in range(f_out):
                    for k in range(3):
                        i = stride * j + k - 1
                        if 0 <= i < f_in:
                            G[ic * f_in + i, oc * f_out + j] += coeff * wd[ic, k]
        return G, np.repeat(o, f_out)[None, :]

    G1, b1 = sep_matrix(P['dw1'], P['pw1'], P['bn1'], F_E0, 2)
    G2, b2 = sep_matrix(P['dw2'], P['pw2'], P['bn2'], F_E1, 2)
    G3, b3 = sep_matrix(P['dw3'], P['pw3'], P['bn3'], F_E2, 1)

    # df_conv0: grouped (groups=2) (3,3) conv (last time tap) + 1x1 + BN.
    sd0, od0 = bn_fold(P['bn_df0'])
    wg = npa(P['w_df0'])[:, 0, 2, :]
    wpd = npa(P['pw_df0'])[:, :, 0, 0]
    per_g = C // 2
    Gdf0 = np.zeros((2 * NB_DF, C * NB_DF))
    for pc in range(C):
        for oc in range(C):
            g = oc // per_g
            coeff = sd0[pc] * wpd[pc, oc]
            for j in range(NB_DF):
                for k in range(3):
                    i = j + k - 1
                    if 0 <= i < NB_DF:
                        Gdf0[g * NB_DF + i, pc * NB_DF + j] += coeff * wg[oc, k]
    bdf0 = np.repeat(od0, NB_DF)[None, :]

    Gdf1, bdf1 = sep_matrix(P['dw_df1'], P['pw_df1'], P['bn_df1'], F_C0, 2)

    # df_fc_emb: block-diagonal grouped linear, rows permuted from the torch
    # (freq, channel) flatten order to the kernel's channel-major c1 row vector.
    wfc = npa(P['w_fc'])
    ws, hs = DF_IN // FC_GROUPS, EMB // FC_GROUPS
    Gfc = np.zeros((C * F_C1, EMB))
    for cc in range(C):
        for q in range(F_C1):
            mth = q * C + cc
            g, i = mth // ws, mth % ws
            Gfc[cc * F_C1 + q, g * hs:(g + 1) * hs] = wfc[g, i, :]

    # emb_gru.linear_in: natural copy (for cemb) + row-permuted copy for the
    # channel-major e3 vector (folds e3.permute(0,2,3,1).flatten()).
    Win = npa(P['w_lin_in'])[0]                          # (EMB, H)
    Win_e3 = np.zeros_like(Win)
    for cc in range(C):
        for f in range(F_E3):
            Win_e3[cc * F_E3 + f, :] = Win[f * C + cc, :]

    def blockdiag(A, B):
        out = np.zeros((A.shape[0] + B.shape[0], A.shape[1] + B.shape[1]))
        out[:A.shape[0], :A.shape[1]] = A
        out[A.shape[0]:, A.shape[1]:] = B
        return out

    entries = [
        # same-depth stages merged into block-diagonal matrices
        ('WA', blockdiag(G0, Gdf0)), ('bA', np.concatenate([b0, bdf0], axis=1)),    # (48,256)
        ('WB', blockdiag(G1, Gdf1)), ('bB', np.concatenate([b1, bdf1], axis=1)),    # (256,128)
        ('WC', blockdiag(G2, Gfc)),
        ('bC', np.concatenate([b2, np.zeros((1, EMB))], axis=1)),                   # (128,64)
        ('WD', G3), ('bD', b3),                                                     # (32,32)
        ('We3', Win_e3), ('Wc', Win),                                               # (32,32) x2
        ('Wih', npa(P['w_ih']).T), ('bih', npa(P['b_ih'])[None, :]),                # (32,96)
        ('Whh', npa(P['w_hh']).T), ('bhh', npa(P['b_hh'])[None, :]),                # (32,96)
        ('Wout', npa(P['w_lin_out'])[0]),                                           # (32,32)
    ]

    offsets, blocks, r = {}, [], 0
    for name, mat in entries:
        rows, cols = mat.shape
        rpad = ((rows + 7) // 8) * 8                     # keep 8-sublane alignment
        buf = np.zeros((rpad, LANES), np.float32)
        buf[:rows, :cols] = mat.astype(np.float32)
        offsets[name] = (r, rows, cols)
        blocks.append(buf)
        r += rpad
    slab = jnp.asarray(np.concatenate(blocks, axis=0))
    mats64 = {name: mat for name, mat in entries}        # float64, for the tight reference
    return slab, offsets, mats64


# --------------- tight reference: the same folded math, numpy float64 ---------
def folded_reference_np(feats, h0, M, T):
    relu = lambda v: np.maximum(v, 0.0)
    sig = lambda v: 1.0 / (1.0 + np.exp(-v))
    X = np.asarray(feats, np.float64)

    a = relu(X @ M['WA'] + M['bA'])                      # [e0 | c0]
    b = relu(a @ M['WB'] + M['bB'])                      # [e1 | c1]
    c = relu(b @ M['WC'] + M['bC'])                      # [e2 | cemb]
    e0, c0 = a[:, :C * F_E0], a[:, C * F_E0:]
    e1 = b[:, :C * F_E1]
    e2, cemb = c[:, :C * F_E2], c[:, C * F_E2:]
    e3 = relu(e2 @ M['WD'] + M['bD'])
    gx = relu(e3 @ M['We3'] + cemb @ M['Wc'])
    gi = gx @ M['Wih'] + M['bih']

    h = np.asarray(h0, np.float64)
    hall = np.zeros((T, H))
    for t in range(T):
        gh = h @ M['Whh'] + M['bhh']
        gt = gi[t:t + 1]
        r = sig(gt[:, :H] + gh[:, :H])
        z = sig(gt[:, H:2 * H] + gh[:, H:2 * H])
        n = np.tanh(gt[:, 2 * H:] + r * gh[:, 2 * H:])
        h = (1.0 - z) * n + z * h
        hall[t] = h[0]
    emb = relu(hall @ M['Wout'])
    return e0, e1, e2, e3, emb, c0, h


# -------------------- literal per-frame reference (plain JAX) -----------------
_HI = jax.lax.Precision.HIGHEST


def _conv(x, w, stride=(1, 1), padding=((0, 0), (0, 0)), groups=1):
    return jax.lax.conv_general_dilated(
        x, w, window_strides=stride, padding=padding,
        dimension_numbers=('NCHW', 'OIHW', 'NCHW'),
        feature_group_count=groups, precision=_HI)


def _bn_relu(x, bn):
    g, b, mu, v = bn
    y = (x - mu[None, :, None, None]) * (
        g[None, :, None, None] / jnp.sqrt(v[None, :, None, None] + EPS)) \
        + b[None, :, None, None]
    return jnp.maximum(y, 0.0)


def _grouped_linear(x, w):
    g, ws, hs = w.shape
    y = jnp.matmul(x.reshape(g, 1, ws), w, precision=_HI).reshape(1, g * hs)
    return jnp.maximum(y, 0.0)


def reference_frame(feat_erb, feat_spec, h, P):
    """Literal Encoder.forward for one streaming frame (eval-mode BN):
    feat_erb (1,1,1,NB_ERB), feat_spec (1,2,1,NB_DF), h (1,H)."""
    def sep(x, dw, pw, bn, stride):
        y = _conv(x, dw, stride=(1, stride), padding=((0, 0), (1, 1)), groups=C)
        y = _conv(y, pw)
        return _bn_relu(y, bn)

    e0 = _bn_relu(_conv(feat_erb, P['w_erb0'], padding=((2, 0), (1, 1))), P['bn0'])
    e1 = sep(e0, P['dw1'], P['pw1'], P['bn1'], 2)
    e2 = sep(e1, P['dw2'], P['pw2'], P['bn2'], 2)
    e3 = sep(e2, P['dw3'], P['pw3'], P['bn3'], 1)
    emb = jnp.transpose(e3, (0, 2, 3, 1)).reshape(1, EMB)

    c0 = _conv(feat_spec, P['w_df0'], padding=((2, 0), (1, 1)), groups=2)
    c0 = _bn_relu(_conv(c0, P['pw_df0']), P['bn_df0'])
    c1 = sep(c0, P['dw_df1'], P['pw_df1'], P['bn_df1'], 2)
    cemb = _grouped_linear(jnp.transpose(c1, (0, 2, 3, 1)).reshape(1, DF_IN),
                           P['w_fc'])

    emb = emb + cemb                                     # combine = Add
    x = _grouped_linear(emb, P['w_lin_in'])              # linear_in + ReLU
    gi = jnp.matmul(x, P['w_ih'].T, precision=_HI) + P['b_ih']
    gh = jnp.matmul(h, P['w_hh'].T, precision=_HI) + P['b_hh']
    r = jax.nn.sigmoid(gi[:, 0:H] + gh[:, 0:H])
    z = jax.nn.sigmoid(gi[:, H:2 * H] + gh[:, H:2 * H])
    n = jnp.tanh(gi[:, 2 * H:3 * H] + r * gh[:, 2 * H:3 * H])
    h_new = (1.0 - z) * n + z * h
    emb_out = _grouped_linear(h_new, P['w_lin_out'])     # linear_out + ReLU
    return e0, e1, e2, e3, emb_out, c0, h_new


# ------------------------------------ main -------------------------------------
if __name__ == "__main__":
    key = jax.random.PRNGKey(0)
    k_erb, k_spec, k_h, k_par = jax.random.split(key, 4)

    T = 8                                                # streaming frames per call
    feat_erb = jax.random.normal(k_erb, (1, 1, T, NB_ERB), jnp.float32)
    feat_spec = jax.random.normal(k_spec, (1, 2, T, NB_DF), jnp.float32)
    hidden = jax.random.normal(k_h, (1, 1, H), jnp.float32)

    raw = init_raw_params(k_par)
    packed, offsets, mats64 = fold_and_pack(raw)

    # --- Pallas kernel (one call, all T frames) --------------------------------
    out_slab, h_out = encoder_forward(feat_erb, feat_spec, hidden, packed, offsets)
    jax.block_until_ready((out_slab, h_out))
    e0k, e1k, e2k, e3k, embk, c0k, hk = split_outputs(out_slab, h_out)

    # tight: kernel vs identical folded math in numpy float64.
    feats_np = np.concatenate(
        [np.asarray(feat_erb[0, 0]),
         np.asarray(jnp.transpose(feat_spec[0], (1, 0, 2))).reshape(T, 2 * NB_DF)],
        axis=-1)
    r_e0, r_e1, r_e2, r_e3, r_emb, r_c0, r_h = folded_reference_np(
        feats_np, np.asarray(hidden).reshape(1, H), mats64, T)
    out_np = np.asarray(out_slab)
    tight = dict(atol=1e-3, rtol=1e-3)
    ok = True
    ok &= bool(np.allclose(out_np[:, SLOT['e0'][0]:SLOT['e0'][0] + C * F_E0], r_e0, **tight))
    ok &= bool(np.allclose(out_np[:, SLOT['e1'][0]:SLOT['e1'][0] + C * F_E1], r_e1, **tight))
    ok &= bool(np.allclose(out_np[:, SLOT['e2'][0]:SLOT['e2'][0] + C * F_E2], r_e2, **tight))
    ok &= bool(np.allclose(out_np[:, SLOT['e3'][0]:SLOT['e3'][0] + C * F_E3], r_e3, **tight))
    ok &= bool(np.allclose(out_np[:, SLOT['emb'][0]:SLOT['emb'][0] + EMB], r_emb, **tight))
    ok &= bool(np.allclose(out_np[:, SLOT['c0'][0]:SLOT['c0'][0] + C * F_C0], r_c0, **tight))
    ok &= bool(np.allclose(np.asarray(h_out), r_h, **tight))
    assert ok, "kernel does not match its folded math (numpy float64)"

    # loose: kernel vs the literal per-frame module forward (precision-path delta).
    tol = dict(atol=1e-2, rtol=1e-2)
    h_l = hidden.reshape(1, H)
    ok = True
    for t in range(T):
        l_e0, l_e1, l_e2, l_e3, l_emb, l_c0, h_l = reference_frame(
            feat_erb[:, :, t:t + 1, :], feat_spec[:, :, t:t + 1, :], h_l, raw)
        ok &= bool(jnp.allclose(e0k[:, :, t, :], l_e0[:, :, 0, :], **tol))
        ok &= bool(jnp.allclose(e1k[:, :, t, :], l_e1[:, :, 0, :], **tol))
        ok &= bool(jnp.allclose(e2k[:, :, t, :], l_e2[:, :, 0, :], **tol))
        ok &= bool(jnp.allclose(e3k[:, :, t, :], l_e3[:, :, 0, :], **tol))
        ok &= bool(jnp.allclose(embk[t], l_emb, **tol))
        ok &= bool(jnp.allclose(c0k[:, :, t, :], l_c0[:, :, 0, :], **tol))
    ok &= bool(jnp.allclose(hk.reshape(1, H), h_l, **tol))
    assert ok, "kernel does not match the per-frame Encoder reference"

    print("KERNEL_OK")
</pallas_src>

<mosaic_0001>
module attributes {stable_mosaic.version = 11 : i64} {
  func.func @kernel(%arg0: memref<672x256xf32, #tpu.memory_space<vmem>>, %arg1: memref<8x48xf32, #tpu.memory_space<vmem>>, %arg2: memref<1x32xf32, #tpu.memory_space<vmem>>, %arg3: memref<8x768xf32, #tpu.memory_space<vmem>>, %arg4: memref<1x32xf32, #tpu.memory_space<vmem>>, %arg5: memref<8x96xf32, #tpu.memory_space<vmem>>, %arg6: memref<8x32xf32, #tpu.memory_space<vmem>>) attributes {dimension_semantics = [], scalar_prefetch = 0 : i64, scratch_operands = 2 : i64, tpu.core_type = #tpu.core_type<tc>} {
    %c0 = arith.constant 0 : index
    %c0_0 = arith.constant 0 : index
    %0 = vector.load %arg1[%c0, %c0_0] : memref<8x48xf32, #tpu.memory_space<vmem>>, vector<8x48xf32>
    %c0_1 = arith.constant 0 : index
    %c0_2 = arith.constant 0 : index
    %1 = vector.load %arg0[%c0_1, %c0_2] : memref<672x256xf32, #tpu.memory_space<vmem>>, vector<48x256xf32>
    %cst = arith.constant dense<0.000000e+00> : vector<8x256xf32>
    %2 = tpu.matmul %0, %1, %cst {dimension_numbers = #tpu.dot_dimension_numbers<[1], [0], [0], [1], [0, 0, 1, 1], [], []>} : vector<8x48xf32>, vector<48x256xf32>, vector<8x256xf32> -> vector<8x256xf32>
    %c48 = arith.constant 48 : index
    %c0_3 = arith.constant 0 : index
    %3 = vector.load %arg0[%c48, %c0_3] : memref<672x256xf32, #tpu.memory_space<vmem>>, vector<1x256xf32>
    %4 = vector.broadcast %3 : vector<1x256xf32> to vector<8x256xf32>
    %5 = arith.addf %2, %4 : vector<8x256xf32>
    %cst_4 = arith.constant 0.000000e+00 : f32
    %6 = vector.broadcast %cst_4 : f32 to vector<8x256xf32>
    %7 = arith.maximumf %5, %6 : vector<8x256xf32>
    %c56 = arith.constant 56 : index
    %c0_5 = arith.constant 0 : index
    %8 = vector.load %arg0[%c56, %c0_5] : memref<672x256xf32, #tpu.memory_space<vmem>>, vector<256x128xf32>
    %cst_6 = arith.constant dense<0.000000e+00> : vector<8x128xf32>
    %9 = tpu.matmul %7, %8, %cst_6 {dimension_numbers = #tpu.dot_dimension_numbers<[1], [0], [0], [1], [0, 0, 1, 1], [], []>} : vector<8x256xf32>, vector<256x128xf32>, vector<8x128xf32> -> vector<8x128xf32>
    %c312 = arith.constant 312 : index
    %c0_7 = arith.constant 0 : index
    %10 = vector.load %arg0[%c312, %c0_7] : memref<672x256xf32, #tpu.memory_space<vmem>>, vector<1x128xf32>
    %11 = vector.broadcast %10 : vector<1x128xf32> to vector<8x128xf32>
    %12 = arith.addf %9, %11 : vector<8x128xf32>
    %cst_8 = arith.constant 0.000000e+00 : f32
    %13 = vector.broadcast %cst_8 : f32 to vector<8x128xf32>
    %14 = arith.maximumf %12, %13 : vector<8x128xf32>
    %c320 = arith.constant 320 : index
    %c0_9 = arith.constant 0 : index
    %15 = vector.load %arg0[%c320, %c0_9] : memref<672x256xf32, #tpu.memory_space<vmem>>, vector<128x64xf32>
    %cst_10 = arith.constant dense<0.000000e+00> : vector<8x64xf32>
    %16 = tpu.matmul %14, %15, %cst_10 {dimension_numbers = #tpu.dot_dimension_numbers<[1], [0], [0], [1], [0, 0, 1, 1], [], []>} : vector<8x128xf32>, vector<128x64xf32>, vector<8x64xf32> -> vector<8x64xf32>
    %c448 = arith.constant 448 : index
    %c0_11 = arith.constant 0 : index
    %17 = vector.load %arg0[%c448, %c0_11] : memref<672x256xf32, #tpu.memory_space<vmem>>, vector<1x64xf32>
    %18 = vector.broadcast %17 : vector<1x64xf32> to vector<8x64xf32>
    %19 = arith.addf %16, %18 : vector<8x64xf32>
    %cst_12 = arith.constant 0.000000e+00 : f32
    %20 = vector.broadcast %cst_12 : f32 to vector<8x64xf32>
    %21 = arith.maximumf %19, %20 : vector<8x64xf32>
    %22 = vector.extract_strided_slice %21 {offsets = [0, 0], sizes = [8, 32], strides = [1, 1]} : vector<8x64xf32> to vector<8x32xf32>
    %23 = vector.extract_strided_slice %21 {offsets = [0, 32], sizes = [8, 32], strides = [1, 1]} : vector<8x64xf32> to vector<8x32xf32>
    %c456 = arith.constant 456 : index
    %c0_13 = arith.constant 0 : index
    %24 = vector.load %arg0[%c456, %c0_13] : memref<672x256xf32, #tpu.memory_space<vmem>>, vector<32x32xf32>
    %cst_14 = arith.constant dense<0.000000e+00> : vector<8x32xf32>
    %25 = tpu.matmul %22, %24, %cst_14 {dimension_numbers = #tpu.dot_dimension_numbers<[1], [0], [0], [1], [0, 0, 1, 1], [], []>} : vector<8x32xf32>, vector<32x32xf32>, vector<8x32xf32> -> vector<8x32xf32>
    %c488 = arith.constant 488 : index
    %c0_15 = arith.constant 0 : index
    %26 = vector.load %arg0[%c488, %c0_15] : memref<672x256xf32, #tpu.memory_space<vmem>>, vector<1x32xf32>
    %27 = vector.broadcast %26 : vector<1x32xf32> to vector<8x32xf32>
    %28 = arith.addf %25, %27 : vector<8x32xf32>
    %cst_16 = arith.constant 0.000000e+00 : f32
    %29 = vector.broadcast %cst_16 : f32 to vector<8x32xf32>
    %30 = arith.maximumf %28, %29 : vector<8x32xf32>
    %c496 = arith.constant 496 : index
    %c0_17 = arith.constant 0 : index
    %31 = vector.load %arg0[%c496, %c0_17] : memref<672x256xf32, #tpu.memory_space<vmem>>, vector<32x32xf32>
    %cst_18 = arith.constant dense<0.000000e+00> : vector<8x32xf32>
    %32 = tpu.matmul %30, %31, %cst_18 {dimension_numbers = #tpu.dot_dimension_numbers<[1], [0], [0], [1], [0, 0, 1, 1], [], []>} : vector<8x32xf32>, vector<32x32xf32>, vector<8x32xf32> -> vector<8x32xf32>
    %c528 = arith.constant 528 : index
    %c0_19 = arith.constant 0 : index
    %33 = vector.load %arg0[%c528, %c0_19] : memref<672x256xf32, #tpu.memory_space<vmem>>, vector<32x32xf32>
    %cst_20 = arith.constant dense<0.000000e+00> : vector<8x32xf32>
    %34 = tpu.matmul %23, %33, %cst_20 {dimension_numbers = #tpu.dot_dimension_numbers<[1], [0], [0], [1], [0, 0, 1, 1], [], []>} : vector<8x32xf32>, vector<32x32xf32>, vector<8x32xf32> -> vector<8x32xf32>
    %35 = arith.addf %32, %34 : vector<8x32xf32>
    %cst_21 = arith.constant 0.000000e+00 : f32
    %36 = vector.broadcast %cst_21 : f32 to vector<8x32xf32>
    %37 = arith.maximumf %35, %36 : vector<8x32xf32>
    %c560 = arith.constant 560 : index
    %c0_22 = arith.constant 0 : index
    %38 = vector.load %arg0[%c560, %c0_22] : memref<672x256xf32, #tpu.memory_space<vmem>>, vector<32x96xf32>
    %cst_23 = arith.constant dense<0.000000e+00> : vector<8x96xf32>
    %39 = tpu.matmul %37, %38, %cst_23 {dimension_numbers = #tpu.dot_dimension_numbers<[1], [0], [0], [1], [0, 0, 1, 1], [], []>} : vector<8x32xf32>, vector<32x96xf32>, vector<8x96xf32> -> vector<8x96xf32>
    %c592 = arith.constant 592 : index
    %c0_24 = arith.constant 0 : index
    %40 = vector.load %arg0[%c592, %c0_24] : memref<672x256xf32, #tpu.memory_space<vmem>>, vector<1x96xf32>
    %41 = vector.broadcast %40 : vector<1x96xf32> to vector<8x96xf32>
    %42 = arith.addf %39, %41 : vector<8x96xf32>
    %c0_25 = arith.constant 0 : index
    %c0_26 = arith.constant 0 : index
    %43 = vector.load %arg5[%c0_25, %c0_26] : memref<8x96xf32, #tpu.memory_space<vmem>>, vector<8x96xf32>
    tpu.vector_store %arg5[%c0_25, %c0_26], %42 {strides = array<i32>} : memref<8x96xf32, #tpu.memory_space<vmem>>, vector<8x96xf32>,
    %c600 = arith.constant 600 : index
    %c0_27 = arith.constant 0 : index
    %44 = vector.load %arg0[%c600, %c0_27] : memref<672x256xf32, #tpu.memory_space<vmem>>, vector<32x96xf32>
    %c632 = arith.constant 632 : index
    %c0_28 = arith.constant 0 : index
    %45 = vector.load %arg0[%c632, %c0_28] : memref<672x256xf32, #tpu.memory_space<vmem>>, vector<1x96xf32>
    %c0_29 = arith.constant 0 : index
    %c0_30 = arith.constant 0 : index
    %46 = vector.load %arg2[%c0_29, %c0_30] : memref<1x32xf32, #tpu.memory_space<vmem>>, vector<1x32xf32>
    %c0_i32 = arith.constant 0 : i32
    %c8_i32 = arith.constant 8 : i32
    %47 = arith.addi %c0_i32, %c8_i32 : i32
    %c1_i32 = arith.constant 1 : i32
    %48 = scf.for %arg7 = %c0_i32 to %47 step %c1_i32 iter_args(%arg8 = %46) -> (vector<1x32xf32>)  : i32 {
      %66 = arith.index_cast %arg7 : i32 to index
      %c0_50 = arith.constant 0 : index
      %67 = vector.load %arg5[%66, %c0_50] : memref<8x96xf32, #tpu.memory_space<vmem>>, vector<1x96xf32>
      %cst_51 = arith.constant dense<0.000000e+00> : vector<1x96xf32>
      %68 = tpu.matmul %arg8, %44, %cst_51 {dimension_numbers = #tpu.dot_dimension_numbers<[1], [0], [0], [1], [0, 0, 1, 1], [], []>} : vector<1x32xf32>, vector<32x96xf32>, vector<1x96xf32> -> vector<1x96xf32>
      %69 = arith.addf %68, %45 : vector<1x96xf32>
      %70 = vector.extract_strided_slice %67 {offsets = [0, 0], sizes = [1, 32], strides = [1, 1]} : vector<1x96xf32> to vector<1x32xf32>
      %71 = vector.extract_strided_slice %69 {offsets = [0, 0], sizes = [1, 32], strides = [1, 1]} : vector<1x96xf32> to vector<1x32xf32>
      %72 = arith.addf %70, %71 : vector<1x32xf32>
      %73 = arith.negf %72 : vector<1x32xf32>
      %74 = math.exp %73 : vector<1x32xf32>
      %cst_52 = arith.constant 1.000000e+00 : f32
      %75 = vector.broadcast %cst_52 : f32 to vector<1x32xf32>
      %76 = arith.addf %75, %74 : vector<1x32xf32>
      %77 = arith.divf %75, %76 : vector<1x32xf32>
      %78 = vector.extract_strided_slice %67 {offsets = [0, 32], sizes = [1, 32], strides = [1, 1]} : vector<1x96xf32> to vector<1x32xf32>
      %79 = vector.extract_strided_slice %69 {offsets = [0, 32], sizes = [1, 32], strides = [1, 1]} : vector<1x96xf32> to vector<1x32xf32>
      %80 = arith.addf %78, %79 : vector<1x32xf32>
      %81 = arith.negf %80 : vector<1x32xf32>
      %82 = math.exp %81 : vector<1x32xf32>
      %cst_53 = arith.constant 1.000000e+00 : f32
      %83 = vector.broadcast %cst_53 : f32 to vector<1x32xf32>
      %84 = arith.addf %83, %82 : vector<1x32xf32>
      %85 = arith.divf %83, %84 : vector<1x32xf32>
      %86 = vector.extract_strided_slice %67 {offsets = [0, 64], sizes = [1, 32], strides = [1, 1]} : vector<1x96xf32> to vector<1x32xf32>
      %87 = vector.extract_strided_slice %69 {offsets = [0, 64], sizes = [1, 32], strides = [1, 1]} : vector<1x96xf32> to vector<1x32xf32>
      %88 = arith.mulf %77, %87 : vector<1x32xf32>
      %89 = arith.addf %86, %88 : vector<1x32xf32>
      %90 = math.tanh %89 : vector<1x32xf32>
      %cst_54 = arith.constant 1.000000e+00 : f32
      %91 = vector.broadcast %cst_54 : f32 to vector<1x32xf32>
      %92 = arith.subf %91, %85 : vector<1x32xf32>
      %93 = arith.mulf %92, %90 : vector<1x32xf32>
      %94 = arith.mulf %85, %arg8 : vector<1x32xf32>
      %95 = arith.addf %93, %94 : vector<1x32xf32>
      %96 = arith.index_cast %arg7 : i32 to index
      %c0_55 = arith.constant 0 : index
      %97 = vector.load %arg6[%96, %c0_55] : memref<8x32xf32, #tpu.memory_space<vmem>>, vector<1x32xf32>
      tpu.vector_store %arg6[%96, %c0_55], %95 {strides = array<i32>} : memref<8x32xf32, #tpu.memory_space<vmem>>, vector<1x32xf32>,
      scf.yield %95 : vector<1x32xf32>
    }
    %c8_i32_31 = arith.constant 8 : i32
    %c0_32 = arith.constant 0 : index
    %c0_33 = arith.constant 0 : index
    %49 = vector.load %arg4[%c0_32, %c0_33] : memref<1x32xf32, #tpu.memory_space<vmem>>, vector<1x32xf32>
    tpu.vector_store %arg4[%c0_32, %c0_33], %48 {strides = array<i32>} : memref<1x32xf32, #tpu.memory_space<vmem>>, vector<1x32xf32>,
    %c0_34 = arith.constant 0 : index
    %c0_35 = arith.constant 0 : index
    %50 = vector.load %arg6[%c0_34, %c0_35] : memref<8x32xf32, #tpu.memory_space<vmem>>, vector<8x32xf32>
    %c640 = arith.constant 640 : index
    %c0_36 = arith.constant 0 : index
    %51 = vector.load %arg0[%c640, %c0_36] : memref<672x256xf32, #tpu.memory_space<vmem>>, vector<32x32xf32>
    %cst_37 = arith.constant dense<0.000000e+00> : vector<8x32xf32>
    %52 = tpu.matmul %50, %51, %cst_37 {dimension_numbers = #tpu.dot_dimension_numbers<[1], [0], [0], [1], [0, 0, 1, 1], [], []>} : vector<8x32xf32>, vector<32x32xf32>, vector<8x32xf32> -> vector<8x32xf32>
    %cst_38 = arith.constant 0.000000e+00 : f32
    %53 = vector.broadcast %cst_38 : f32 to vector<8x32xf32>
    %54 = arith.maximumf %52, %53 : vector<8x32xf32>
    %cst_39 = arith.constant 0.000000e+00 : f32
    %55 = vector.broadcast %cst_39 : f32 to vector<8x768xf32>
    %c0_40 = arith.constant 0 : index
    %c0_41 = arith.constant 0 : index
    %56 = vector.load %arg3[%c0_40, %c0_41] : memref<8x768xf32, #tpu.memory_space<vmem>>, vector<8x768xf32>
    tpu.vector_store %arg3[%c0_40, %c0_41], %55 {strides = array<i32>} : memref<8x768xf32, #tpu.memory_space<vmem>>, vector<8x768xf32>,
    %57 = vector.extract_strided_slice %7 {offsets = [0, 0], sizes = [8, 128], strides = [1, 1]} : vector<8x256xf32> to vector<8x128xf32>
    %c0_42 = arith.constant 0 : index
    %c0_43 = arith.constant 0 : index
    %58 = vector.load %arg3[%c0_42, %c0_43] : memref<8x768xf32, #tpu.memory_space<vmem>>, vector<8x128xf32>
    tpu.vector_store %arg3[%c0_42, %c0_43], %57 {strides = array<i32>} : memref<8x768xf32, #tpu.memory_space<vmem>>, vector<8x128xf32>,
    %59 = vector.extract_strided_slice %14 {offsets = [0, 0], sizes = [8, 64], strides = [1, 1]} : vector<8x128xf32> to vector<8x64xf32>
    %c0_44 = arith.constant 0 : index
    %c128 = arith.constant 128 : index
    %60 = vector.load %arg3[%c0_44, %c128] : memref<8x768xf32, #tpu.memory_space<vmem>>, vector<8x64xf32>
    tpu.vector_store %arg3[%c0_44, %c128], %59 {strides = array<i32>} : memref<8x768xf32, #tpu.memory_space<vmem>>, vector<8x64xf32>,
    %c0_45 = arith.constant 0 : index
    %c256 = arith.constant 256 : index
    %61 = vector.load %arg3[%c0_45, %c256] : memref<8x768xf32, #tpu.memory_space<vmem>>, vector<8x32xf32>
    tpu.vector_store %arg3[%c0_45, %c256], %22 {strides = array<i32>} : memref<8x768xf32, #tpu.memory_space<vmem>>, vector<8x32xf32>,
    %c0_46 = arith.constant 0 : index
    %c384 = arith.constant 384 : index
    %62 = vector.load %arg3[%c0_46, %c384] : memref<8x768xf32, #tpu.memory_space<vmem>>, vector<8x32xf32>
    tpu.vector_store %arg3[%c0_46, %c384], %30 {strides = array<i32>} : memref<8x768xf32, #tpu.memory_space<vmem>>, vector<8x32xf32>,
    %c0_47 = arith.constant 0 : index
    %c512 = arith.constant 512 : index
    %63 = vector.load %arg3[%c0_47, %c512] : memref<8x768xf32, #tpu.memory_space<vmem>>, vector<8x32xf32>
    tpu.vector_store %arg3[%c0_47, %c512], %54 {strides = array<i32>} : memref<8x768xf32, #tpu.memory_space<vmem>>, vector<8x32xf32>,
    %64 = vector.extract_strided_slice %7 {offsets = [0, 128], sizes = [8, 128], strides = [1, 1]} : vector<8x256xf32> to vector<8x128xf32>
    %c0_48 = arith.constant 0 : index
    %c640_49 = arith.constant 640 : index
    %65 = vector.load %arg3[%c0_48, %c640_49] : memref<8x768xf32, #tpu.memory_space<vmem>>, vector<8x128xf32>
    tpu.vector_store %arg3[%c0_48, %c640_49], %64 {strides = array<i32>} : memref<8x768xf32, #tpu.memory_space<vmem>>, vector<8x128xf32>,
    return
  }
}

</mosaic_0001>

<bundles_post_ra>
// kernel: tpu_custom_call.1
= control target key start
LH: loop header
LB: loop body
LE: loop exit
PB: predicated region body
PF: predicated region fallthrough
CT: control target
= control target key end

     0   :  { %10 = vsyncpa [#allocation5], 0  ;;  %s1559_s0 = inlined_call_operand.hbm [shape: f32[672,256], index: 0, kind: input, shape index: {}]   ;;  %s1560_s1 = inlined_call_operand.hbm [shape: f32[8,48], index: 1, kind: input, shape index: {}]   ;;  %s1561_s2 = inlined_call_operand.vmem [shape: f32[1,32], index: 2, kind: input, shape index: {}]   ;;  %s1562_s3 = inlined_call_operand.hbm [shape: f32[8,768], index: 3, kind: output, shape index: {0}]   ;;  %s1563_s4 = inlined_call_operand.hbm [shape: f32[1,32], index: 4, kind: output, shape index: {1}]  }
   0x1   :  { %11 = vsyncpa [#allocation8], 0 }
   0x2   :  { %12 = vsyncpa [#allocation6], 0 }
   0x3   :  { %13 = vsyncpa [#allocation11], 0  ;;  %s1360_s15 = smov [#allocation4]   ;;  %s1248_s19 = scalar_lea.hbm %s1559_s0, 21504 }
   0x4   :  { %s19_s16 = sshll.u32 %s1360_s15, 4  ;;  %p1249_p0 = scmp.ne.s32.totalorder %s1559_s0, %s1248_s19  ;;  %s20_s16 = int_to_ptr.vmem [resolvable:$true] %s19_s16 }
   0x5   :  { %p1252_p1 = scmp.lt.u32.totalorder %s1248_s19, %s1559_s0 }
   0x7   :  { %p1254_p2 = pnand %p1252_p1, %p1249_p0 }
   0x9   :  { %1257 = shalt.err (!%p1254_p2)
}
   0xa   :  { %s1258_s24 = scalar_lea.vmem %s20_s16, 21504  ;;  %p1263_p4 = scmp.lt.s32.totalorder %s20_s16, %s20_s16 }
   0xb   :  { %p1259_p3 = scmp.ne.s32.totalorder %s20_s16, %s1258_s24  ;;  %p1264_p5 = scmp.lt.s32.totalorder %s1258_s24, %s1258_s24 }
   0xd   :  { %p1265_p6 = por %p1264_p5, %p1263_p4 }
   0xf   :  { %p1266_p7 = pnand %p1265_p6, %p1259_p3 }
  0x11   :  { %1269 = shalt.err (!%p1266_p7)
}
  0x12   :  { %s1361_s25 = smov 256   ;;  %s1362_s26 = smov 16  }
  0x13   :  { %25 = dma.hbm_to_vmem [thread:$0]  %s1559_s0, 21504, %s20_s16, [#allocation5], %s1361_s25, %s1361_s25, %s1362_s26  }
  0x14   :  { %s1363_s29 = smov [#allocation7]   ;;  %s1270_s7 = scalar_lea.hbm %s1560_s1, 128 }
  0x15   :  { %s32_s30 = sshll.u32 %s1363_s29, 4  ;;  %p1271_p8 = scmp.ne.s32.totalorder %s1560_s1, %s1270_s7  ;;  %s33_s30 = int_to_ptr.vmem [resolvable:$true] %s32_s30 }
  0x16   :  { %p1274_p9 = scmp.lt.u32.totalorder %s1270_s7, %s1560_s1 }
  0x18   :  { %p1276_p10 = pnand %p1274_p9, %p1271_p8 }
  0x1a   :  { %1279 = shalt.err (!%p1276_p10)
}
  0x1b   :  { %s1280_s12 = scalar_lea.vmem %s33_s30, 128  ;;  %p1285_p12 = scmp.lt.s32.totalorder %s33_s30, %s33_s30 }
  0x1c   :  { %p1281_p11 = scmp.ne.s32.totalorder %s33_s30, %s1280_s12  ;;  %p1286_p13 = scmp.lt.s32.totalorder %s1280_s12, %s1280_s12 }
  0x1e   :  { %p1287_p0 = por %p1286_p13, %p1285_p12 }
  0x20   :  { %p1288_p1 = pnand %p1287_p0, %p1281_p11 }
  0x22   :  { %1291 = shalt.err (!%p1288_p1)
}
  0x23   :  { %35 = dma.hbm_to_vmem [thread:$0]  %s1560_s1, 128, %s33_s30, [#allocation8]  }
  0x24   :  { %1344 = dma.done.wait [#allocation5], 21504  }
  0x25   :  { %1345 = vsyncadd [#allocation5], 4294945792 }
  0x26   :  { %1346 = dma.done.wait [#allocation8], 128  }
  0x27   :  { %1347 = vsyncadd [#allocation8], 4294967168  ;;  %v1364_v0 = vmov 0.0   ;;  %v1426_v1 = vld [vmem:[#allocation4 + $0x4b0] sm:$0xff]  ;;  %v1428_v2 = vld [vmem:[#allocation4 + $0x4c0] sm:$0xff]  ;;  %vm70_vm0 = vcmask 392192  }
  0x28   :  { %138 = vmatprep.mubr.f32.mxu0 %v1364_v0  ;;  %v1430_v3 = vld [vmem:[#allocation4 + $0x4d0] sm:$0xff]  ;;  %v1432_v4 = vld [vmem:[#allocation4 + $0x4e0] sm:$0xff]  ;;  %v46_v7 = vld [vmem:[#allocation4 + $0x8] sm:$0xff]  ;;  %vm1366_vm1 = vmmov 0   ;;  %vm344_vm2 = vcmask 261120   ;;  %s1367_s1 = smov 96  }
  0x29   :  { %v1434_v5 = vld [vmem:[#allocation4 + $0x4f0] ss:$0 sm:$0xff]  ;;  %v48_v8 = vld [vmem:[#allocation4 + $0x18] sm:$0xff]  ;;  %v45_v9 = vld [vmem:[#allocation4] sm:$0xff]  ;;  %vm653_vm3 = vcmask 785408  }
  0x2a   :  { %v1439_v6 = vld [vmem:[%s1561_s2] sm:$0x1]   ;;  %v1104_v10 = vpack.c.bf16 %v48_v8, %v46_v7  ;;  %v50_v12 = vld [vmem:[#allocation4 + $0x28] sm:$0xff]  ;;  %v52_v13 = vld [vmem:[#allocation4 + $0x38] sm:$0xff]  ;;  %s1496_s2 = smov 0  }
  0x2b   :  { %v47_v11 = vld [vmem:[#allocation4 + $0x10] sm:$0xff]  ;;  %v1108_v15 = vpack.c.bf16 %v52_v13, %v50_v12  ;;  %v49_v16 = vld [vmem:[#allocation4 + $0x20] sm:$0xff]  ;;  %v54_v18 = vld [vmem:[#allocation4 + $0x48] sm:$0xff] }
  0x2c   :  { %v1106_v14 = vpack.c.bf16 %v47_v11, %v45_v9  ;;  %v51_v17 = vld [vmem:[#allocation4 + $0x30] sm:$0xff]  ;;  %1105 = vmatprep.subr.bf16.mxu0 %v1104_v10  ;;  %v56_v19 = vld [vmem:[#allocation4 + $0x58] sm:$0xff]  ;;  %v53_v20 = vld [vmem:[#allocation4 + $0x40] sm:$0xff] }
  0x2d   :  { %v1110_v21 = vpack.c.bf16 %v51_v17, %v49_v16  ;;  %v55_v22 = vld [vmem:[#allocation4 + $0x50] sm:$0xff]  ;;  %v164_v24 = vld [vmem:[#allocation4 + $0x180] sm:$0xff]  ;;  %v1112_v25 = vpack.c.bf16 %v56_v19, %v54_v18 }
  0x2e   :  { %1107 = vmatpush1.bf16.msra.mxu0 %v1106_v14  ;;  %v163_v23 = vld [vmem:[#allocation4 + $0x170] sm:$0xff]  ;;  %v148_v28 = vld [vmem:[#allocation4 + $0x80] sm:$0xff]  ;;  %v1114_v37 = vpack.c.bf16 %v55_v22, %v53_v20  ;;  %v1365_v20 = vmov 0.0|0.0  }
  0x2f   :  { %1109 = vmatprep.subr.bf16.mxu0 %v1108_v15  ;;  %v1116_v26 = vpack.c.bf16 %v164_v24, %v163_v23  ;;  %v147_v27 = vld [vmem:[#allocation4 + $0x70] sm:$0xff]  ;;  %v166_v31 = vld [vmem:[#allocation4 + $0x1a0] sm:$0xff] }
  0x30   :  { %v165_v29 = vld [vmem:[#allocation4 + $0x190] sm:$0xff]  ;;  %v1118_v30 = vpack.c.bf16 %v148_v28, %v147_v27  ;;  %v150_v33 = vld [vmem:[#allocation4 + $0xa0] sm:$0xff] }
  0x31   :  { %v149_v32 = vld [vmem:[#allocation4 + $0x90] sm:$0xff]  ;;  %1117 = vmatprep.subr.bf16.mxu1 %v1116_v26  ;;  %v1120_v34 = vpack.c.bf16 %v166_v31, %v165_v29  ;;  %v168_v36 = vld [vmem:[#allocation4 + $0x1c0] sm:$0xff] }
  0x32   :  { %v167_v35 = vld [vmem:[#allocation4 + $0x1b0] sm:$0xff]  ;;  %1111 = vmatpush1.bf16.msra.mxu0 %v1110_v21  ;;  %1119 = vmatpush3.bf16.msra.mxu1 %v1118_v30  ;;  %v1122_v38 = vpack.c.bf16 %v150_v33, %v149_v32  ;;  %v152_v41 = vld [vmem:[#allocation4 + $0xc0] sm:$0xff] }
  0x33   :  { %1113 = vmatprep.subr.bf16.mxu0 %v1112_v25  ;;  %1121 = vmatprep.subr.bf16.mxu1 %v1120_v34  ;;  %v1124_v39 = vpack.c.bf16 %v168_v36, %v167_v35  ;;  %v151_v40 = vld [vmem:[#allocation4 + $0xb0] sm:$0xff]  ;;  %v170_v43 = vld [vmem:[#allocation4 + $0x1e0] sm:$0xff]  ;;  %v60_v36 = vlaneseq }
  0x34   :  { %v169_v42 = vld [vmem:[#allocation4 + $0x1d0] sm:$0xff]  ;;  %v44_v44 = vld [vmem:[#allocation7] sm:$0xff]  ;;  %v1126_v45 = vpack.c.bf16 %v152_v41, %v151_v40 }
  0x35   :  { %v1128_v46 = vpack.c.bf16 %v170_v43, %v169_v42  ;;  %v153_v47 = vld [vmem:[#allocation4 + $0xd0] sm:$0xff]  ;;  %v154_v48 = vld [vmem:[#allocation4 + $0xe0] sm:$0xff] }
  0x36   :  { %1115 = vmatpush1.bf16.msra.mxu0 %v1114_v37  ;;  %1123 = vmatpush3.bf16.msra.mxu1 %v1122_v38  ;;  %v171_v49 = vld [vmem:[#allocation4 + $0x1f0] sm:$0xff]  ;;  %v172_v50 = vld [vmem:[#allocation4 + $0x200] sm:$0xff]  ;;  %v1130_v51 = vpack.c.bf16 %v154_v48, %v153_v47  ;;  %v61_v37 = vshrl.u32 %v60_v36, 7 }
  0x37   :  { %1125 = vmatprep.subr.bf16.mxu1 %v1124_v39  ;;  %v1132_v52 = vpack.c.bf16 %v172_v50, %v171_v49  ;;  %v155_v53 = vld [vmem:[#allocation4 + $0xf0] sm:$0xff]  ;;  %v156_v54 = vld [vmem:[#allocation4 + $0x100] sm:$0xff]  ;;  %1148 = vmatprep.subr.bf16.mxu0 %v1365_v20 }
  0x38   :  { %v173_v55 = vld [vmem:[#allocation4 + $0x210] sm:$0xff]  ;;  %v174_v56 = vld [vmem:[#allocation4 + $0x220] sm:$0xff]  ;;  %v1134_v57 = vpack.c.bf16 %v156_v54, %v155_v53  ;;  %v62_v38 = vsub.s32 0, %v61_v37  ;;  %v66_v40 = vsub.s32 1, %v61_v37 }
  0x39   :  { %913 = vmatmul.mubr.msk.f32.vlgmr.msra.gmra.mrb[0].mxu0 %vm70_vm0, %v44_v44  ;;  %v1136_v58 = vpack.c.bf16 %v174_v56, %v173_v55  ;;  %v157_v59 = vld [vmem:[#allocation4 + $0x110] sm:$0xff]  ;;  %v158_v60 = vld [vmem:[#allocation4 + $0x120] sm:$0xff] }
  0x3a   :  { %1127 = vmatpush3.bf16.msra.mxu1 %v1126_v45  ;;  %v175_v61 = vld [vmem:[#allocation4 + $0x230] sm:$0xff]  ;;  %v176_v62 = vld [vmem:[#allocation4 + $0x240] sm:$0xff]  ;;  %v1138_v63 = vpack.c.bf16 %v158_v60, %v157_v59  ;;  %1035 = vmatprep.mubr.msk.f32.mxu0 %vm1366_vm1, %v1364_v0 }
  0x3b   :  { %1129 = vmatprep.subr.bf16.mxu1 %v1128_v46  ;;  %v1140_v7 = vpack.c.bf16 %v176_v62, %v175_v61  ;;  %v159_v8 = vld [vmem:[#allocation4 + $0x130] sm:$0xff]  ;;  %v160_v9 = vld [vmem:[#allocation4 + $0x140] sm:$0xff] }
  0x3c   :  { %v1142_v10 = vpack.c.bf16 %v160_v9, %v159_v8  ;;  %v177_v11 = vld [vmem:[#allocation4 + $0x250] sm:$0xff]  ;;  %v178_v12 = vld [vmem:[#allocation4 + $0x260] sm:$0xff] }
  0x3d   :  { %v1144_v13 = vpack.c.bf16 %v178_v12, %v177_v11  ;;  %v161_v14 = vld [vmem:[#allocation4 + $0x150] sm:$0xff]  ;;  %v162_v15 = vld [vmem:[#allocation4 + $0x160] sm:$0xff] }
  0x3e   :  { %1131 = vmatpush3.bf16.msra.mxu1 %v1130_v51  ;;  %v1146_v16 = vpack.c.bf16 %v162_v15, %v161_v14  ;;  %v251_v17 = vld [vmem:[#allocation4 + $0x280] sm:$0xff]  ;;  %v252_v18 = vld [vmem:[#allocation4 + $0x290] sm:$0xff] }
  0x3f   :  { %1133 = vmatprep.subr.bf16.mxu1 %v1132_v52  ;;  %v253_v19 = vld [vmem:[#allocation4 + $0x2a0] sm:$0xff]  ;;  %v1149_v21 = vpack.c.bf16 %v252_v18, %v251_v17  ;;  %v254_v22 = vld [vmem:[#allocation4 + $0x2b0] sm:$0xff] }
  0x40   :  { %v1152_v23 = vpack.c.bf16 %v254_v22, %v253_v19  ;;  %v255_v24 = vld [vmem:[#allocation4 + $0x2c0] sm:$0xff]  ;;  %v256_v25 = vld [vmem:[#allocation4 + $0x2d0] sm:$0xff] }
  0x41   :  { %1150 = vmatpush3.bf16.msra.mxu0 %v1149_v21  ;;  %v1155_v26 = vpack.c.bf16 %v256_v25, %v255_v24  ;;  %v257_v27 = vld [vmem:[#allocation4 + $0x2e0] sm:$0xff]  ;;  %v258_v28 = vld [vmem:[#allocation4 + $0x2f0] sm:$0xff] }
  0x42   :  { %1135 = vmatpush3.bf16.msra.mxu1 %v1134_v57  ;;  %1151 = vmatprep.subr.bf16.mxu0 %v1365_v20  ;;  %v1158_v29 = vpack.c.bf16 %v258_v28, %v257_v27  ;;  %v259_v30 = vld [vmem:[#allocation4 + $0x300] sm:$0xff]  ;;  %v260_v31 = vld [vmem:[#allocation4 + $0x310] sm:$0xff] }
  0x43   :  { %1137 = vmatprep.subr.bf16.mxu1 %v1136_v58  ;;  %v1161_v32 = vpack.c.bf16 %v260_v31, %v259_v30  ;;  %v261_v33 = vld [vmem:[#allocation4 + $0x320] sm:$0xff]  ;;  %v262_v34 = vld [vmem:[#allocation4 + $0x330] sm:$0xff] }
  0x44   :  { %v1164_v35 = vpack.c.bf16 %v262_v34, %v261_v33  ;;  %v58_v39 = vld [vmem:[#allocation4 + $0x60] ss:$8 sm:$0x3]  ;;  %v264_v50 = vld [vmem:[#allocation4 + $0x350] sm:$0xff] }
  0x45   :  { %1153 = vmatpush3.bf16.msra.mxu0 %v1152_v23  ;;  %v63_v41 = vrot.slane %v58_v39, %v62_v38  ;;  %v67_v42 = vrot.slane %v58_v39, %v66_v40  ;;  %v263_v49 = vld [vmem:[#allocation4 + $0x340] sm:$0xff]  ;;  %v266_v53 = vld [vmem:[#allocation4 + $0x370] sm:$0xff] }
  0x46   :  { %1139 = vmatpush3.bf16.msra.mxu1 %v1138_v63  ;;  %1154 = vmatprep.subr.bf16.mxu0 %v1365_v20  ;;  %v1167_v51 = vpack.c.bf16 %v264_v50, %v263_v49  ;;  %v265_v52 = vld [vmem:[#allocation4 + $0x360] sm:$0xff]  ;;  %v339_v55 = vld [vmem:[#allocation4 + $0x390] sm:$0xff] }
  0x47   :  { %1141 = vmatprep.subr.bf16.mxu1 %v1140_v7  ;;  %v1170_v54 = vpack.c.bf16 %v266_v53, %v265_v52  ;;  %v340_v56 = vld [vmem:[#allocation4 + $0x3a0] sm:$0xff]  ;;  %v179_v59 = vld [vmem:[#allocation4 + $0x270] ss:$0 sm:$0xff] }
  0x48   :  { %v1173_v57 = vpack.c.bf16 %v340_v56, %v339_v55  ;;  %v341_v7 = vld [vmem:[#allocation4 + $0x3b0] sm:$0xff]  ;;  %v342_v8 = vld [vmem:[#allocation4 + $0x3c0] sm:$0xff] }
  0x49   :  { %1156 = vmatpush3.bf16.msra.mxu0 %v1155_v26  ;;  %v1176_v9 = vpack.c.bf16 %v342_v8, %v341_v7  ;;  %v423_v11 = vld [vmem:[#allocation4 + $0x420] sm:$0xff]  ;;  %v424_v12 = vld [vmem:[#allocation4 + $0x430] sm:$0xff] }
  0x4a   :  { %1143 = vmatpush3.bf16.msra.mxu1 %v1142_v10  ;;  %1157 = vmatprep.subr.bf16.mxu0 %v1365_v20  ;;  %v267_v10 = vld [vmem:[#allocation4 + $0x380] ss:$0 sm:$0xff]  ;;  %v426_v19 = vld [vmem:[#allocation4 + $0x450] sm:$0xff] }
  0x4b   :  { %1145 = vmatprep.subr.bf16.mxu1 %v1144_v13  ;;  %v425_v18 = vld [vmem:[#allocation4 + $0x440] sm:$0xff]  ;;  %v576_v23 = vld [vmem:[#allocation4 + $0x470] sm:$0xff] }
  0x4c   :  { %v1182_v21 = vpack.c.bf16 %v426_v19, %v425_v18  ;;  %v575_v22 = vld [vmem:[#allocation4 + $0x460] sm:$0xff]  ;;  %v420_v26 = vld [vmem:[#allocation4 + $0x3f0] sm:$0xff] }
  0x4d   :  { %1159 = vmatpush3.bf16.msra.mxu0 %v1158_v29  ;;  %v1191_v24 = vpack.c.bf16 %v576_v23, %v575_v22  ;;  %v419_v25 = vld [vmem:[#allocation4 + $0x3e0] sm:$0xff]  ;;  %v422_v29 = vld [vmem:[#allocation4 + $0x410] sm:$0xff] }
  0x4e   :  { %1147 = vmatpush3.bf16.msra.mxu1 %v1146_v16  ;;  %1160 = vmatprep.subr.bf16.mxu0 %v1365_v20  ;;  %v1179_v16 = vpack.c.bf16 %v424_v12, %v423_v11  ;;  %v1185_v27 = vpack.c.bf16 %v420_v26, %v419_v25  ;;  %v421_v28 = vld [vmem:[#allocation4 + $0x400] sm:$0xff]  ;;  %v578_v38 = vld [vmem:[#allocation4 + $0x490] sm:$0xff] }
  0x4f   :  { %1172 = vmatprep.subr.bf16.mxu1 %v1365_v20  ;;  %v1188_v31 = vpack.c.bf16 %v422_v29, %v421_v28  ;;  %v577_v37 = vld [vmem:[#allocation4 + $0x480] sm:$0xff] }
  0x50   :  { %v1194_v39 = vpack.c.bf16 %v578_v38, %v577_v37 }
  0x51   :  { %1162 = vmatpush3.bf16.msra.mxu0 %v1161_v32  ;;  %v343_v32 = vld [vmem:[#allocation4 + $0x3d0] ss:$0 sm:$0xff] }
  0x52   :  { %1163 = vmatprep.subr.bf16.mxu0 %v1365_v20 }
  0x55   :  { %1165 = vmatpush3.bf16.msra.mxu0 %v1164_v35 }
  0x56   :  { %1166 = vmatprep.subr.bf16.mxu0 %v1365_v20 }
  0x59   :  { %1168 = vmatpush3.bf16.msra.mxu0 %v1167_v51  ;;  %v1352_v51 = vmov %v1439_v6  }
  0x5a   :  { %1169 = vmatprep.subr.bf16.mxu0 %v1365_v20 }
  0x5d   :  { %1171 = vmatpush3.bf16.msra.mxu0 %v1170_v54 }
  0x5e   :  { %1190 = vmatprep.subr.bf16.mxu0 %v1365_v20 }
 0x10c   :  { %v140_v43 = vpop.f32.mrb[0].mxu0 }
 0x10d   :  { %v1449_v44 = vadd.f32 %v140_v43, %v63_v41  ;;  %v142_v45 = vpop.f32.mrb[1].mxu0  ;;  %v579_v43 = vld [vmem:[#allocation4 + $0x4a0] ss:$0 sm:$0xff] }
 0x10e   :  { %v1451_v46 = vadd.f32 %v142_v45, %v67_v42 }
 0x10f   :  { %v145_v48 = vmax.f32 %v1449_v44, 0.0 }
 0x110   :  { %v146_v47 = vmax.f32 %v1451_v46, 0.0 }
 0x112   :  { %244 = vmatprep.mubr.f32.mxu1 %v146_v47 }
 0x113   :  { %245 = vmatmul.mubr.f32.vlgmr.msra.gmra.mrb[0].mxu1 %v145_v48 }
 0x114   :  { %1046 = vmatprep.mubr.msk.f32.mxu1 %vm1366_vm1, %v1364_v0  ;;  %1174 = vmatpush3.bf16.msra.mxu1 %v1173_v57 }
 0x115   :  { %1175 = vmatprep.subr.bf16.mxu1 %v1365_v20 }
 0x118   :  { %1177 = vmatpush3.bf16.msra.mxu1 %v1176_v9 }
 0x119   :  { %1178 = vmatprep.subr.bf16.mxu1 %v1365_v20 }
 0x1e6   :  { %v953_v58 = vpop.f32.mrb[0].mxu1 }
 0x1e7   :  { %v954_v60 = vpop.f32.mrb[1].mxu1 }
 0x1e8   :  { %v955_v61 = vadd.f32 %v954_v60, %v953_v58 }
 0x1ea   :  { %v1466_v62 = vadd.f32 %v955_v61, %v179_v59 }
 0x1ec   :  { %v250_v63 = vmax.f32 %v1466_v62, 0.0 }
 0x1ee   :  { %1036 = vmatmul.mubr.f32.vlgmr.msra.gmra.mrb[2].mxu0 %v250_v63 }
 0x1ef   :  { %1079 = vmatprep.mubr.msk.f32.mxu0 %vm1366_vm1, %v1364_v0  ;;  %1192 = vmatpush3.bf16.msra.mxu0 %v1191_v24 }
 0x1f0   :  { %1193 = vmatprep.subr.bf16.mxu0 %v1365_v20 }
 0x1f3   :  { %1195 = vmatpush3.bf16.msra.mxu0 %v1194_v39 }
 0x2c1   :  { %v334_v13 = vpop.f32.mrb[2].mxu0 }
 0x2c2   :  { %v335_v14 = vadd.f32 %v334_v13, %v267_v10  ;;  %v1037_v15 = vpop.f32.mrb[3].mxu0 }
 0x2c4   :  { %v1474_v17 = vmax.f32 %v335_v14, 0.0 }
 0x2c6   :  { %1047 = vmatmul.mubr.msk.f32.vlgmr.msra.gmra.mrb[2].mxu1 %vm344_vm2, %v1474_v17  ;;  %427 = vrot.lane.b32.xlu0 %v1474_v17, %s1367_s1 }
 0x2c7   :  { %1180 = vmatpush3.bf16.msra.mxu1 %v1179_v16  ;;  %1057 = vmatprep.mubr.msk.f32.mxu1 %vm1366_vm1, %v1364_v0 }
 0x2c8   :  { %1181 = vmatprep.subr.bf16.mxu1 %v1365_v20 }
 0x2cb   :  { %1183 = vmatpush3.bf16.msra.mxu1 %v1182_v21 }
 0x2cc   :  { %1184 = vmatprep.subr.bf16.mxu1 %v1365_v20 }
 0x338   :  { %v428_v30 = vpop.permute.xlu0 %427 }
 0x339   :  { %1058 = vmatmul.mubr.msk.f32.vlgmr.msra.gmra.mrb[4].mxu1 %vm344_vm2, %v428_v30 }
 0x33a   :  { %1186 = vmatpush3.bf16.msra.mxu1 %v1185_v27  ;;  %1068 = vmatprep.mubr.msk.f32.mxu1 %vm1366_vm1, %v1364_v0 }
 0x33b   :  { %1187 = vmatprep.subr.bf16.mxu1 %v1365_v20 }
 0x33e   :  { %1189 = vmatpush3.bf16.msra.mxu1 %v1188_v31 }
 0x399   :  { %v414_v33 = vpop.f32.mrb[2].mxu1 }
 0x39a   :  { %v1488_v34 = vadd.f32 %v414_v33, %v343_v32  ;;  %v1048_v35 = vpop.f32.mrb[3].mxu1 }
 0x39c   :  { %v418_v36 = vmax.f32 %v1488_v34, 0.0 }
 0x39e   :  { %1069 = vmatmul.mubr.msk.f32.vlgmr.msra.gmra.mrb[4].mxu1 %vm344_vm2, %v418_v36 }
 0x471   :  { %v570_v40 = vpop.f32.mrb[4].mxu1 }
 0x472   :  { %v574_v41 = vmax.f32 %v570_v40, 0.0  ;;  %v1070_v42 = vpop.f32.mrb[5].mxu1 }
 0x474   :  { %1080 = vmatmul.mubr.msk.f32.vlgmr.msra.gmra.mrb[4].mxu0 %vm344_vm2, %v574_v41 }
 0x547   :  { %v649_v45 = vpop.f32.mrb[4].mxu0 }
 0x548   :  { %v650_v49 = vadd.f32 %v649_v45, %v579_v43  ;;  %v1081_v50 = vpop.f32.mrb[5].mxu0 }
 0x54a   :  { %654 = vst.msk [vmem:[#allocation2] sm:$0xff] %vm653_vm3, %v650_v49 }
 0x54b LB: > { %v1197_v52 = vpack.c.bf16 %v1428_v2, %v1426_v1  ;;  %v1368_v53 = vmov 0.0|0.0   ;;  %v1200_v54 = vpack.c.bf16 %v1432_v4, %v1430_v3  ;;  %vm1369_vm4 = vmmov 0   ;;  %s1371_s16 = smov 64   ;;  %s668_s17 = scalar_lea.vmem [#allocation2], %s1358_s2  ;;  %s1358_s2 = sphi %s1496_s2, %s666_s2   ;;  %v1354_v51 = vphi %v1352_v51, %v1353_v51  }
 0x54c   : > { %1196 = vmatprep.subr.bf16.mxu0 %v1368_v53  ;;  %v1370_v6 = vmov 0.0   ;;  %s1372_s18 = smov 96   ;;  %s1373_s19 = smov 32   ;;  %vm777_vm5 = vcmask 253952  }
 0x54d   : > { %1198 = vmatpush3.bf16.msra.mxu0 %v1197_v52  ;;  %1090 = vmatprep.mubr.msk.f32.mxu0 %vm1369_vm4, %v1370_v6  ;;  %s776_s20 = scalar_lea.vmem [#allocation3], %s1358_s2  ;;  %s666_s2 = sadd.s32 1, %s1358_s2  }
 0x54e   : > { %1199 = vmatprep.subr.bf16.mxu0 %v1368_v53  ;;  %p663_p2 = scmp.ge.s32.totalorder %s666_s2, 8  }
 0x54f   :  { %v782_v23 = vld [vmem:[#allocation4 + $0x500] sm:$0xff] (%p663_p2)  ;;  %v783_v24 = vld [vmem:[#allocation4 + $0x510] sm:$0xff] (%p663_p2)  ;;  %864 = vst [vmem:[#allocation9 + $0x20] sm:$0xff] (%p663_p2), %v1364_v0  ;;  %861 = vst [vmem:[#allocation9 + $0x8] sm:$0xff] (%p663_p2), %v1364_v0  ;;  %vm867_vm6 = vcmask (%p663_p2), 523264   ;;  %s1374_s21 = smov (%p663_p2), [#allocation10]  }
 0x550   :  { %v784_v25 = vld [vmem:[#allocation4 + $0x520] sm:$0xff] (%p663_p2)  ;;  %862 = vst [vmem:[#allocation9 + $0x10] sm:$0xff] (%p663_p2), %v1364_v0  ;;  %863 = vst [vmem:[#allocation9 + $0x18] sm:$0xff] (%p663_p2), %v1364_v0  ;;  %v1203_v1 = vpack.c.bf16 (%p663_p2), %v783_v24, %v782_v23  ;;  %v785_v2 = vld [vmem:[#allocation4 + $0x530] sm:$0xff] (%p663_p2)  ;;  %s889_s22 = sshll.u32 (%p663_p2), %s1374_s21, 4  ;;  %s890_s22 = int_to_ptr.vmem [resolvable:$true] %s889_s22 }
 0x551   : > { %1201 = vmatpush3.bf16.msra.mxu0 %v1200_v54  ;;  %v669_v58 = vld [vmem:[%s668_s17] sm:$0x1]  ;;  %866 = vst [vmem:[#allocation9] sm:$0xff] (%p663_p2), %v145_v48  ;;  %872 = vst [vmem:[#allocation9 + $0x28] sm:$0xff] (%p663_p2), %v146_v47  ;;  %v1206_v3 = vpack.c.bf16 (%p663_p2), %v785_v2, %v784_v25  ;;  %s1292_s23 = scalar_lea.vmem (%p663_p2), %s890_s22, 16  ;;  %s1296_s24 = scalar_lea.vmem (%p663_p2), %s890_s22, 32 }
 0x552   :  { %1202 = vmatprep.subr.bf16.mxu0 (%p663_p2), %v1365_v20  ;;  %869 = vst.msk [vmem:[#allocation9 + $0x10] sm:$0xff] (%p663_p2), %vm344_vm2, %v1474_v17  ;;  %870 = vst.msk [vmem:[#allocation9 + $0x18] sm:$0xff] (%p663_p2), %vm344_vm2, %v418_v36  ;;  %p1293_p3 = scmp.ne.s32.totalorder (%p663_p2), %s890_s22, %s1292_s23  ;;  %p1297_p4 = scmp.lt.s32.totalorder (%p663_p2), %s890_s22, %s890_s22 }
 0x553   :  { %868 = vst.msk [vmem:[#allocation9 + $0x8] sm:$0xff] (%p663_p2), %vm867_vm6, %v250_v63  ;;  %p1298_p5 = scmp.lt.s32.totalorder (%p663_p2), %s1296_s24, %s1292_s23 }
 0x554   : > { %1091 = vmatmul.mubr.msk.f32.vlgmr.msra.gmra.mrb[0].mxu0 %vm344_vm2, %v1354_v51 }
 0x555   :  { %1101 = vmatprep.mubr.msk.f32.mxu0 (%p663_p2), %vm1366_vm1, %v1364_v0  ;;  %1204 = vmatpush3.bf16.msra.mxu0 (%p663_p2), %v1203_v1  ;;  %p1299_p6 = por (%p663_p2), %p1298_p5, %p1297_p4 }
 0x556   :  { %1205 = vmatprep.subr.bf16.mxu0 (%p663_p2), %v1365_v20 }
 0x557   :  { %p1300_p7 = pnand (%p663_p2), %p1299_p6, %p1293_p3 }
 0x559   :  { %1207 = vmatpush3.bf16.msra.mxu0 (%p663_p2), %v1206_v3 }
 0x627   : > { %v739_v55 = vpop.f32.mrb[0].mxu0 }
 0x628   : > { %v740_v56 = vadd.f32 %v739_v55, %v1434_v5  ;;  %v1092_v57 = vpop.f32.mrb[1].mxu0 }
 0x62a   : > { %751 = vrot.lane.b32.xlu0 %v740_v56, %s1371_s16  ;;  %v743_v59 = vadd.f32 %v740_v56, %v669_v58 }
 0x62c   : > { %v919_v60 = vmul.f32 -1.442695, %v743_v59 }
 0x62e   : > { %1242 = vpow2.f32 %v919_v60 }
 0x638   : > { %v1243_v61 = vpop.eup %1242 }
 0x639   : > { %v747_v7 = vadd.f32 1.0, %v1243_v61 }
 0x63b   : > { %1244 = vrcp.f32 %v747_v7 }
 0x645   : > { %v1245_v8 = vpop.eup %1244 }
 0x646   : > { %v761_v15 = vsub.f32 1.0, %v1245_v8 }
 0x69c   : > { %v752_v9 = vpop.permute.xlu0 %751 }
 0x69d   : > { %v754_v10 = vmul.f32 %v1245_v8, %v752_v9 }
 0x69f   : > { %756 = vrot.lane.b32.xlu0 %v754_v10, %s1371_s16 }
 0x711   : > { %v757_v11 = vpop.permute.xlu0 %756 }
 0x712   : > { %v759_v12 = vadd.f32 %v757_v11, %v669_v58 }
 0x714   : > { %1246 = vtanh.f32 %v759_v12 }
 0x71e   : > { %v1247_v13 = vpop.eup %1246 }
 0x71f   : > { %763 = vrot.lane.b32.xlu1 %v1247_v13, %s1372_s18 }
 0x723   : > { %767 = vrot.lane.b32.xlu1 %v1354_v51, %s1373_s19 }
 0x791   : > { %v764_v14 = vpop.permute.xlu1 %763 }
 0x792   : > { %v766_v18 = vmul.f32 %v764_v14, %v761_v15 }
 0x795   : > { %v768_v16 = vpop.permute.xlu1 %767 }
 0x796   : > { %v770_v19 = vmul.f32 %v1245_v8, %v768_v16 }
 0x798   : > { %v771_v21 = vadd.f32 %v770_v19, %v766_v18 }
 0x79a   : > { %773 = vrot.lane.b32.xlu0 %v771_v21, %s1372_s18 }
 0x807   :  { %665 = sbr.rel (!%p663_p2) target bundleno = 1355 (0x54b), region = 58 }
 0x80c   : > { %v774_v22 = vpop.permute.xlu0 %773  }
 0x80d   : > { %778 = vst.msk [vmem:[%s776_s20] sm:$0x1] %vm777_vm5, %v774_v22  ;;  %v1353_v51 = vmov %v774_v22   ;;  %780 = vst.msk [vmem:[#allocation10] sm:$0x1] (%p663_p2), %vm777_vm5, %v774_v22 }
 0x814   :  { %v781_v0 = vld [vmem:[#allocation3] sm:$0xff] }
 0x815   :  { %1102 = vmatmul.mubr.msk.f32.vlgmr.msra.gmra.mrb[0].mxu0 %vm344_vm2, %v781_v0 }
 0x816   :  { %1303 = shalt.err (!%p1300_p7)
}
 0x817   :  { %s1304_s27 = scalar_lea.hbm %s1563_s4, 16 }
 0x818   :  { %p1305_p8 = scmp.ne.s32.totalorder %s1563_s4, %s1304_s27  ;;  %p1308_p9 = scmp.lt.u32.totalorder %s1304_s27, %s1563_s4 }
 0x81a   :  { %p1310_p10 = pnand %p1308_p9, %p1305_p8 }
 0x81c   :  { %1313 = shalt.err (!%p1310_p10)
}
 0x81d   :  { %892 = dma.vmem_to_hbm [thread:$0]  %s890_s22, 16, %s1563_s4, [#allocation11]  }
 0x81e   :  { %s1375_s8 = smov [#allocation9]  }
 0x81f   :  { %s879_s9 = sshll.u32 %s1375_s8, 4  ;;  %s880_s9 = int_to_ptr.vmem [resolvable:$true] %s879_s9 }
 0x820   :  { %s1314_s10 = scalar_lea.vmem %s880_s9, 768  ;;  %p1319_p12 = scmp.lt.s32.totalorder %s880_s9, %s880_s9 }
 0x821   :  { %p1315_p11 = scmp.ne.s32.totalorder %s880_s9, %s1314_s10  ;;  %p1320_p13 = scmp.lt.s32.totalorder %s1314_s10, %s1314_s10 }
 0x823   :  { %p1321_p0 = por %p1320_p13, %p1319_p12 }
 0x825   :  { %p1322_p1 = pnand %p1321_p0, %p1315_p11 }
 0x8e8   :  { %v855_v4 = vpop.f32.mrb[0].mxu0 }
 0x8e9   :  { %v859_v5 = vmax.f32 %v855_v4, 0.0  ;;  %v1103_v20 = vpop.f32.mrb[1].mxu0 }
 0x8eb   :  { %871 = vst.msk [vmem:[#allocation9 + $0x20] sm:$0xff] %vm344_vm2, %v859_v5 }
 0x8ec   :  { %1325 = shalt.err (!%p1322_p1)
}
 0x8ed   :  { %s1326_s0 = scalar_lea.hbm %s1562_s3, 768 }
 0x8ee   :  { %p1327_p2 = scmp.ne.s32.totalorder %s1562_s3, %s1326_s0  ;;  %p1330_p3 = scmp.lt.u32.totalorder %s1326_s0, %s1562_s3 }
 0x8f0   :  { %p1332_p4 = pnand %p1330_p3, %p1327_p2 }
 0x8f2   :  { %1335 = shalt.err (!%p1332_p4)
}
 0x8f3   :  { %882 = dma.vmem_to_hbm [thread:$0]  %s880_s9, 768, %s1562_s3, [#allocation6]  }
 0x8f4   :  { %1348 = dma.done.wait [#allocation6], 768  }
 0x8f5   :  { %1349 = vsyncadd [#allocation6], 4294966528 }
 0x8f6   :  { %1350 = dma.done.wait [#allocation11], 16  }
 0x8f7   :  { %1351 = vsyncadd [#allocation11], 4294967280 }
 0x8f8   :  { %899 = vsyncpa [#allocation5], 1 }
 0x8f9   :  { %900 = vsyncpa [#allocation8], 1 }
 0x8fa   :  { %901 = vsyncpa [#allocation6], 1 }
 0x8fb   :  { %902 = vsyncpa [#allocation11], 1 }

</bundles_post_ra>
